<compile_context>
chip_gen: v7x
topology: tpu7x:2x2x1
jax: 0.10.0
libtpu: 0.0.40
codegen_flags: <defaults>
</compile_context>

<pallas_src>
import functools

import jax
import jax.numpy as jnp
from jax.experimental import pallas as pl
from jax.experimental.pallas import tpu as pltpu

BN_EPS = 1e-5


# ----------------------------- Pallas kernel -----------------------------
def _autoencoder_kernel(q_scale, lat_e, n_tok, lat_d, cin,
                        x_ref, a_enc_ref, w2_enc_ref, a_dec_ref, w2_dec_ref,
                        b_ref, o_ref):
    x = x_ref[...]                                            # (TB, cin) bf16

    # --- encoder: merged (FF-first-layer | skip) bf16 matmul, f32 accumulate.
    h = jnp.dot(x, a_enc_ref[...], preferred_element_type=jnp.float32)
    h = h + b_ref[0:1, :lat_e + n_tok]
    relu_e = jnp.maximum(h[:, :lat_e], 0.0).astype(jnp.bfloat16)
    xqn = (jnp.dot(relu_e, w2_enc_ref[...],
                   preferred_element_type=jnp.float32)
           + h[:, lat_e:lat_e + n_tok])                       # skip + fsq-BN folded in

    # --- FSQ: forward value of z + (round(z) - z).detach() is round(z). f32 math.
    xq = jnp.round(jnp.tanh(xqn) * q_scale)                   # integers, exact in bf16

    # --- decoder: merged (FF-first-layer | skip) matmul; BNs + cumsum prefolded.
    h2 = jnp.dot(xq.astype(jnp.bfloat16), a_dec_ref[...],
                 preferred_element_type=jnp.float32)
    h2 = h2 + b_ref[1:2, :lat_d + cin]
    relu_d = jnp.maximum(h2[:, :lat_d], 0.0).astype(jnp.bfloat16)
    o_ref[...] = (jnp.dot(relu_d, w2_dec_ref[...],
                          preferred_element_type=jnp.float32)
                  + h2[:, lat_d:lat_d + cin])


# ------------------------------- wrapper ---------------------------------
def _pick_tile(B, block_b):
    """Batch tile: VMEM-safe ceiling, multiple of 8, >=2 grid steps when useful."""
    cap = max(8, min(block_b, 8192))          # 8192-row ceiling for v7x 64 MiB VMEM
    if B <= 16:                               # tiny batch: one full-dim block
        return B
    if B <= cap:
        half = -(-B // 2)                     # cdiv(B, 2): both v7x TCs get work
        return min(cap, ((half + 7) // 8) * 8)
    return cap


def linear_autoencoder_forward(x, folded, vocab_size, num_tokens, *, block_b=2048):
    B, T, A = x.shape
    cin = T * A
    lat_e = folded["w2_enc"].shape[0]
    lat_d = folded["w2_dec"].shape[0]

    xflat = x.reshape(B, cin).astype(jnp.bfloat16)            # halves the x HBM read
    tb = _pick_tile(B, block_b)
    grid = (pl.cdiv(B, tb),)                                  # ragged last block OK

    kernel = functools.partial(_autoencoder_kernel,
                               float(vocab_size - 1), lat_e, num_tokens, lat_d, cin)

    def full_spec(arr):
        return pl.BlockSpec(arr.shape, lambda i: (0, 0))

    cp_kwargs = dict(dimension_semantics=("parallel",))
    if tb > 4096:
        cp_kwargs["vmem_limit_bytes"] = 64 << 20
    cparams = pltpu.CompilerParams(**cp_kwargs)

    out_flat = pl.pallas_call(
        kernel,
        out_shape=jax.ShapeDtypeStruct((B, cin), jnp.float32),
        grid=grid,
        in_specs=[
            pl.BlockSpec((tb, cin), lambda i: (i, 0)),
            full_spec(folded["a_enc"]),
            full_spec(folded["w2_enc"]),
            full_spec(folded["a_dec"]),
            full_spec(folded["w2_dec"]),
            full_spec(folded["b"]),
        ],
        out_specs=pl.BlockSpec((tb, cin), lambda i: (i, 0)),
        compiler_params=cparams,
    )(xflat, folded["a_enc"], folded["w2_enc"], folded["a_dec"],
      folded["w2_dec"], folded["b"])

    return out_flat.reshape(B, T, A)


# -------------------- offline parameter folding (once) --------------------
def fold_params(p, T, A, eps=BN_EPS):
    cin = T * A
    hp = jax.lax.Precision.HIGHEST

    def bn_affine(bn):
        s = bn["gamma"] / jnp.sqrt(bn["var"] + eps)
        return s, bn["beta"] - bn["mean"] * s

    # first-difference (cat(x[:,:1], diff(x))) as a matrix on the flattened layout
    D = jnp.eye(cin, dtype=jnp.float32) - jnp.eye(cin, k=A, dtype=jnp.float32)
    # cumsum over time as a matrix on the flattened layout
    idx = jnp.arange(cin)
    ti, ai = idx // A, idx % A
    CS = ((ai[:, None] == ai[None, :]) & (ti[:, None] <= ti[None, :])).astype(jnp.float32)

    # ---- encoder ----
    s_e, t_e = bn_affine(p["enc_bn"])
    w1 = s_e[:, None] * p["enc_w1"]
    b1 = p["enc_b1"] + jnp.dot(t_e, p["enc_w1"], precision=hp)
    s_es, t_es = bn_affine(p["enc_skip_bn"])
    ws = s_es[:, None] * p["enc_skip_w"]
    bs = p["enc_skip_b"] + jnp.dot(t_es, p["enc_skip_w"], precision=hp)
    s_q, t_q = bn_affine(p["fsq_bn"])            # fsq BN folded into the affine sum
    w2_enc = p["enc_w2"] * s_q[None, :]
    ws = ws * s_q[None, :]
    c_enc = (p["enc_b2"] + bs) * s_q + t_q
    a_enc = jnp.concatenate(
        [jnp.dot(D, w1, precision=hp), jnp.dot(D, ws, precision=hp)], axis=1)
    b_enc = jnp.concatenate([b1, c_enc])

    # ---- decoder ----
    s_d, t_d = bn_affine(p["dec_bn"])
    dw1 = s_d[:, None] * p["dec_w1"]
    db1 = p["dec_b1"] + jnp.dot(t_d, p["dec_w1"], precision=hp)
    s_ds, t_ds = bn_affine(p["dec_skip_bn"])
    dsw = s_ds[:, None] * p["dec_skip_w"]
    dsb = p["dec_skip_b"] + jnp.dot(t_ds, p["dec_skip_w"], precision=hp)
    w2_dec = jnp.dot(p["dec_w2"], CS, precision=hp)
    dsw = jnp.dot(dsw, CS, precision=hp)
    c_dec = jnp.dot(p["dec_b2"] + dsb, CS, precision=hp)
    a_dec = jnp.concatenate([dw1, dsw], axis=1)
    b_dec = jnp.concatenate([db1, c_dec])

    width = max(b_enc.shape[0], b_dec.shape[0])
    b_packed = jnp.stack([jnp.pad(b_enc, (0, width - b_enc.shape[0])),
                          jnp.pad(b_dec, (0, width - b_dec.shape[0]))])
    # MXU operands stored bf16 (fold math done in f32); biases stay f32.
    return dict(a_enc=a_enc.astype(jnp.bfloat16),
                w2_enc=w2_enc.astype(jnp.bfloat16),
                a_dec=a_dec.astype(jnp.bfloat16),
                w2_dec=w2_dec.astype(jnp.bfloat16),
                b=b_packed)


# ----------------- deterministic raw (un-folded) parameters ----------------
def _bn_init(key, f):
    k1, k2, k3, k4 = jax.random.split(key, 4)
    return dict(
        gamma=1.0 + 0.1 * jax.random.normal(k1, (f,), jnp.float32),
        beta=0.1 * jax.random.normal(k2, (f,), jnp.float32),
        mean=0.1 * jax.random.normal(k3, (f,), jnp.float32),
        var=jax.random.uniform(k4, (f,), jnp.float32, minval=0.5, maxval=1.5),
    )


def _linear_init(key, fin, fout):
    k1, k2 = jax.random.split(key)
    bound = 1.0 / (fin ** 0.5)
    w = jax.random.uniform(k1, (fin, fout), jnp.float32, minval=-bound, maxval=bound)
    b = jax.random.uniform(k2, (fout,), jnp.float32, minval=-bound, maxval=bound)
    return w, b


def make_params(key, T, A, num_tokens):
    cin = T * A
    lat = 8 * max(cin, num_tokens)
    ks = jax.random.split(key, 11)
    p = {}
    p["enc_bn"] = _bn_init(ks[0], cin)
    p["enc_w1"], p["enc_b1"] = _linear_init(ks[1], cin, lat)
    p["enc_w2"], p["enc_b2"] = _linear_init(ks[2], lat, num_tokens)
    p["enc_skip_bn"] = _bn_init(ks[3], cin)
    p["enc_skip_w"], p["enc_skip_b"] = _linear_init(ks[4], cin, num_tokens)
    p["fsq_bn"] = _bn_init(ks[5], num_tokens)
    p["dec_bn"] = _bn_init(ks[6], num_tokens)
    p["dec_w1"], p["dec_b1"] = _linear_init(ks[7], num_tokens, lat)
    p["dec_w2"], p["dec_b2"] = _linear_init(ks[8], lat, cin)
    p["dec_skip_bn"] = _bn_init(ks[9], num_tokens)
    p["dec_skip_w"], p["dec_skip_b"] = _linear_init(ks[10], num_tokens, cin)
    return p


# -------------------- pure-JAX reference (un-folded f32) -------------------
def reference_forward(x, p, vocab_size, eps=BN_EPS):
    hp = jax.lax.Precision.HIGHEST
    B, T, A = x.shape
    xr = jnp.concatenate([x[:, :1, :], jnp.diff(x, axis=1)], axis=1)
    xf = xr.reshape(B, T * A)

    def bn(v, q):
        return (v - q["mean"]) / jnp.sqrt(q["var"] + eps) * q["gamma"] + q["beta"]

    def lin(v, w, b):
        return jnp.dot(v, w, precision=hp) + b

    h = jnp.maximum(lin(bn(xf, p["enc_bn"]), p["enc_w1"], p["enc_b1"]), 0.0)
    xe = (lin(h, p["enc_w2"], p["enc_b2"])
          + lin(bn(xf, p["enc_skip_bn"]), p["enc_skip_w"], p["enc_skip_b"]))
    z = jnp.tanh(bn(xe, p["fsq_bn"])) * (vocab_size - 1)
    xq = jnp.round(z)
    h = jnp.maximum(lin(bn(xq, p["dec_bn"]), p["dec_w1"], p["dec_b1"]), 0.0)
    xd = (lin(h, p["dec_w2"], p["dec_b2"])
          + lin(bn(xq, p["dec_skip_bn"]), p["dec_skip_w"], p["dec_skip_b"]))
    return jnp.cumsum(xd.reshape(B, T, A), axis=1), z


# ---------- pure-JAX mirror of the folded bf16 kernel math (tight check) ----
def folded_forward_ref(x, folded, vocab_size, num_tokens):
    B, T, A = x.shape
    cin = T * A
    lat_e = folded["w2_enc"].shape[0]
    lat_d = folded["w2_dec"].shape[0]
    q = float(vocab_size - 1)

    xf = x.reshape(B, cin).astype(jnp.bfloat16)
    h = jnp.dot(xf, folded["a_enc"], preferred_element_type=jnp.float32)
    h = h + folded["b"][0:1, :lat_e + num_tokens]
    xqn = (jnp.dot(jnp.maximum(h[:, :lat_e], 0.0).astype(jnp.bfloat16),
                   folded["w2_enc"], preferred_element_type=jnp.float32)
           + h[:, lat_e:lat_e + num_tokens])
    z = jnp.tanh(xqn) * q
    xq = jnp.round(z)
    h2 = jnp.dot(xq.astype(jnp.bfloat16), folded["a_dec"],
                 preferred_element_type=jnp.float32)
    h2 = h2 + folded["b"][1:2, :lat_d + cin]
    out = (jnp.dot(jnp.maximum(h2[:, :lat_d], 0.0).astype(jnp.bfloat16),
                   folded["w2_dec"], preferred_element_type=jnp.float32)
           + h2[:, lat_d:lat_d + cin])
    return out.reshape(B, T, A), z


if __name__ == "__main__":
    # LinearAutoencoder(time_horizon=8, action_dim=4, vocab_size=16, num_tokens=8)
    T, A, vocab_size, num_tokens = 8, 4, 16, 8
    B = 2

    key = jax.random.PRNGKey(0)
    pkey, xkey = jax.random.split(key)
    params = make_params(pkey, T, A, num_tokens)
    folded = fold_params(params, T, A)
    x = jax.random.normal(xkey, (B, T, A), jnp.float32)

    out = linear_autoencoder_forward(x, folded, vocab_size, num_tokens)
    jax.block_until_ready(out)
    assert out.shape == x.shape and out.dtype == jnp.float32
    assert bool(jnp.all(jnp.isfinite(out)))

    # Tight check: same folded bf16 weights / casts in pure JAX (validates the
    # kernel itself).  Skip only if a quantizer bin sits on a knife edge where
    # the hardware tanh approximation could flip it.
    fref, z_bf = folded_forward_ref(x, folded, vocab_size, num_tokens)
    margin_bf = float(jnp.min(0.5 - jnp.abs(z_bf - jnp.round(z_bf))))
    if margin_bf > 3e-2:
        max_err = float(jnp.max(jnp.abs(out - fref)))
        assert bool(jnp.allclose(out, fref, atol=1e-2, rtol=1e-3)), max_err

    # Loose check vs. the un-folded f32 reference (validates the folding); only
    # run when the bf16 z provably rounds to the same bins as the f32 z, and
    # use a tolerance sized for bf16 MXU operands.
    ref, z_f32 = reference_forward(x, params, vocab_size)
    margin_f32 = float(jnp.min(0.5 - jnp.abs(z_f32 - jnp.round(z_f32))))
    z_shift = float(jnp.max(jnp.abs(z_bf.astype(jnp.float32) - z_f32)))
    if margin_f32 > z_shift + 3e-2:
        rel = float(jnp.max(jnp.abs(out - ref)) / (jnp.max(jnp.abs(ref)) + 1.0))
        assert rel < 3e-2, rel

    print("KERNEL_OK")
</pallas_src>

<mosaic_0001>
module attributes {stable_mosaic.version = 11 : i64} {
  func.func @_autoencoder_kernel(%arg0: i32, %arg1: memref<2x32xbf16, #tpu.memory_space<vmem>>, %arg2: memref<32x264xbf16, #tpu.memory_space<vmem>>, %arg3: memref<256x8xbf16, #tpu.memory_space<vmem>>, %arg4: memref<8x288xbf16, #tpu.memory_space<vmem>>, %arg5: memref<256x32xbf16, #tpu.memory_space<vmem>>, %arg6: memref<2x288xf32, #tpu.memory_space<vmem>>, %arg7: memref<2x32xf32, #tpu.memory_space<vmem>>) attributes {dimension_semantics = [#tpu.dimension_semantics<parallel>], iteration_bounds = array<i64: 1>, scalar_prefetch = 0 : i64, scratch_operands = 0 : i64, tpu.core_type = #tpu.core_type<tc>, window_params = [{transform_indices = @transform_0, window_bounds = array<i64: 2, 32>}, {pipeline_mode = #tpu.pipeline_mode<synchronous>, transform_indices = @transform_1, window_bounds = array<i64: 32, 264>}, {pipeline_mode = #tpu.pipeline_mode<synchronous>, transform_indices = @transform_2, window_bounds = array<i64: 256, 8>}, {pipeline_mode = #tpu.pipeline_mode<synchronous>, transform_indices = @transform_3, window_bounds = array<i64: 8, 288>}, {pipeline_mode = #tpu.pipeline_mode<synchronous>, transform_indices = @transform_4, window_bounds = array<i64: 256, 32>}, {pipeline_mode = #tpu.pipeline_mode<synchronous>, transform_indices = @transform_5, window_bounds = array<i64: 2, 288>}, {transform_indices = @transform_6, window_bounds = array<i64: 2, 32>}]} {
    %c0 = arith.constant 0 : index
    %c0_0 = arith.constant 0 : index
    %0 = vector.load %arg1[%c0, %c0_0] : memref<2x32xbf16, #tpu.memory_space<vmem>>, vector<2x32xbf16>
    %c0_1 = arith.constant 0 : index
    %c0_2 = arith.constant 0 : index
    %1 = vector.load %arg2[%c0_1, %c0_2] : memref<32x264xbf16, #tpu.memory_space<vmem>>, vector<32x264xbf16>
    %cst = arith.constant dense<0.000000e+00> : vector<2x264xf32>
    %2 = tpu.matmul %0, %1, %cst {dimension_numbers = #tpu.dot_dimension_numbers<[1], [0], [0], [1], [0, 0, 1, 1], [], []>} : vector<2x32xbf16>, vector<32x264xbf16>, vector<2x264xf32> -> vector<2x264xf32>
    %c0_3 = arith.constant 0 : index
    %c0_4 = arith.constant 0 : index
    %3 = vector.load %arg6[%c0_3, %c0_4] : memref<2x288xf32, #tpu.memory_space<vmem>>, vector<1x264xf32>
    %4 = vector.broadcast %3 : vector<1x264xf32> to vector<2x264xf32>
    %5 = arith.addf %2, %4 : vector<2x264xf32>
    %6 = vector.extract_strided_slice %5 {offsets = [0, 0], sizes = [2, 256], strides = [1, 1]} : vector<2x264xf32> to vector<2x256xf32>
    %cst_5 = arith.constant 0.000000e+00 : f32
    %7 = vector.broadcast %cst_5 : f32 to vector<2x256xf32>
    %8 = arith.maximumf %6, %7 : vector<2x256xf32>
    %9 = arith.truncf %8 : vector<2x256xf32> to vector<2x256xbf16>
    %c0_6 = arith.constant 0 : index
    %c0_7 = arith.constant 0 : index
    %10 = vector.load %arg3[%c0_6, %c0_7] : memref<256x8xbf16, #tpu.memory_space<vmem>>, vector<256x8xbf16>
    %cst_8 = arith.constant dense<0.000000e+00> : vector<2x8xf32>
    %11 = tpu.matmul %9, %10, %cst_8 {dimension_numbers = #tpu.dot_dimension_numbers<[1], [0], [0], [1], [0, 0, 1, 1], [], []>} : vector<2x256xbf16>, vector<256x8xbf16>, vector<2x8xf32> -> vector<2x8xf32>
    %12 = vector.extract_strided_slice %5 {offsets = [0, 256], sizes = [2, 8], strides = [1, 1]} : vector<2x264xf32> to vector<2x8xf32>
    %13 = arith.addf %11, %12 : vector<2x8xf32>
    %14 = math.tanh %13 : vector<2x8xf32>
    %cst_9 = arith.constant 1.500000e+01 : f32
    %15 = vector.broadcast %cst_9 : f32 to vector<2x8xf32>
    %16 = arith.mulf %14, %15 : vector<2x8xf32>
    %17 = math.roundeven %16 : vector<2x8xf32>
    %18 = arith.truncf %17 : vector<2x8xf32> to vector<2x8xbf16>
    %c0_10 = arith.constant 0 : index
    %c0_11 = arith.constant 0 : index
    %19 = vector.load %arg4[%c0_10, %c0_11] : memref<8x288xbf16, #tpu.memory_space<vmem>>, vector<8x288xbf16>
    %cst_12 = arith.constant dense<0.000000e+00> : vector<2x288xf32>
    %20 = tpu.matmul %18, %19, %cst_12 {dimension_numbers = #tpu.dot_dimension_numbers<[1], [0], [0], [1], [0, 0, 1, 1], [], []>} : vector<2x8xbf16>, vector<8x288xbf16>, vector<2x288xf32> -> vector<2x288xf32>
    %c1 = arith.constant 1 : index
    %c0_13 = arith.constant 0 : index
    %21 = vector.load %arg6[%c1, %c0_13] : memref<2x288xf32, #tpu.memory_space<vmem>>, vector<1x288xf32>
    %22 = vector.broadcast %21 : vector<1x288xf32> to vector<2x288xf32>
    %23 = arith.addf %20, %22 : vector<2x288xf32>
    %24 = vector.extract_strided_slice %23 {offsets = [0, 0], sizes = [2, 256], strides = [1, 1]} : vector<2x288xf32> to vector<2x256xf32>
    %cst_14 = arith.constant 0.000000e+00 : f32
    %25 = vector.broadcast %cst_14 : f32 to vector<2x256xf32>
    %26 = arith.maximumf %24, %25 : vector<2x256xf32>
    %27 = arith.truncf %26 : vector<2x256xf32> to vector<2x256xbf16>
    %c0_15 = arith.constant 0 : index
    %c0_16 = arith.constant 0 : index
    %28 = vector.load %arg5[%c0_15, %c0_16] : memref<256x32xbf16, #tpu.memory_space<vmem>>, vector<256x32xbf16>
    %cst_17 = arith.constant dense<0.000000e+00> : vector<2x32xf32>
    %29 = tpu.matmul %27, %28, %cst_17 {dimension_numbers = #tpu.dot_dimension_numbers<[1], [0], [0], [1], [0, 0, 1, 1], [], []>} : vector<2x256xbf16>, vector<256x32xbf16>, vector<2x32xf32> -> vector<2x32xf32>
    %30 = vector.extract_strided_slice %23 {offsets = [0, 256], sizes = [2, 32], strides = [1, 1]} : vector<2x288xf32> to vector<2x32xf32>
    %31 = arith.addf %29, %30 : vector<2x32xf32>
    %c0_18 = arith.constant 0 : index
    %c0_19 = arith.constant 0 : index
    %32 = vector.load %arg7[%c0_18, %c0_19] : memref<2x32xf32, #tpu.memory_space<vmem>>, vector<2x32xf32>
    tpu.vector_store %arg7[%c0_18, %c0_19], %31 {strides = array<i32>} : memref<2x32xf32, #tpu.memory_space<vmem>>, vector<2x32xf32>,
    return
  }
  func.func @transform_0(%arg0: i32) -> (i32, i32) {
    %c0_i32 = arith.constant 0 : i32
    %c0_i32_0 = arith.constant 0 : i32
    return %arg0, %c0_i32 : i32, i32
  }
  func.func @transform_1(%arg0: i32) -> (i32, i32) {
    %c0_i32 = arith.constant 0 : i32
    %c0_i32_0 = arith.constant 0 : i32
    %c0_i32_1 = arith.constant 0 : i32
    return %c0_i32, %c0_i32_0 : i32, i32
  }
  func.func @transform_2(%arg0: i32) -> (i32, i32) {
    %c0_i32 = arith.constant 0 : i32
    %c0_i32_0 = arith.constant 0 : i32
    %c0_i32_1 = arith.constant 0 : i32
    return %c0_i32, %c0_i32_0 : i32, i32
  }
  func.func @transform_3(%arg0: i32) -> (i32, i32) {
    %c0_i32 = arith.constant 0 : i32
    %c0_i32_0 = arith.constant 0 : i32
    %c0_i32_1 = arith.constant 0 : i32
    return %c0_i32, %c0_i32_0 : i32, i32
  }
  func.func @transform_4(%arg0: i32) -> (i32, i32) {
    %c0_i32 = arith.constant 0 : i32
    %c0_i32_0 = arith.constant 0 : i32
    %c0_i32_1 = arith.constant 0 : i32
    return %c0_i32, %c0_i32_0 : i32, i32
  }
  func.func @transform_5(%arg0: i32) -> (i32, i32) {
    %c0_i32 = arith.constant 0 : i32
    %c0_i32_0 = arith.constant 0 : i32
    %c0_i32_1 = arith.constant 0 : i32
    return %c0_i32, %c0_i32_0 : i32, i32
  }
  func.func @transform_6(%arg0: i32) -> (i32, i32) {
    %c0_i32 = arith.constant 0 : i32
    %c0_i32_0 = arith.constant 0 : i32
    return %arg0, %c0_i32 : i32, i32
  }
}

</mosaic_0001>

<bundles_post_ra>
// kernel: tpu_custom_call.1
= control target key start
LH: loop header
LB: loop body
LE: loop exit
PB: predicated region body
PF: predicated region fallthrough
CT: control target
= control target key end

     0   :  { %v839_v2 = vmov 0   ;;  %vm83_vm0 = vcmask 261120   ;;  %v840_v7 = vmov 0.0   ;;  %vm841_vm1 = vmmov 0   ;;  %s1048_s0 = inlined_call_operand.vmem [shape: bf16[2,32], index: 0, kind: input, shape index: {}]   ;;  %s1049_s1 = inlined_call_operand.vmem [shape: bf16[32,264], index: 1, kind: input, shape index: {}]   ;;  %s1050_s2 = inlined_call_operand.vmem [shape: bf16[256,8], index: 2, kind: input, shape index: {}]   ;;  %s1051_s3 = inlined_call_operand.vmem [shape: bf16[8,288], index: 3, kind: input, shape index: {}]   ;;  %s1052_s4 = inlined_call_operand.vmem [shape: bf16[256,32], index: 4, kind: input, shape index: {}]   ;;  %s1053_s5 = inlined_call_operand.vmem [shape: f32[2,288], index: 5, kind: input, shape index: {}]   ;;  %s1054_s6 = inlined_call_operand.hbm [shape: f32[2,32], index: 6, kind: output, shape index: {}]  }
   0x1   :  { %v770_v0 = vld [vmem:[%s1049_s1 + $0x4] ss:$12 sps:$4 sm:$0xff]   ;;  %v772_v1 = vld [vmem:[%s1049_s1] ss:$12 sps:$4 sm:$0xff]   ;;  %119 = vmatprep.mubr.bf16.mxu0 %v839_v2  ;;  %418 = vmatprep.mubr.bf16.mxu1 %v839_v2  ;;  %v773_v3 = vld [vmem:[%s1049_s1 + $0x1c] ss:$12 sps:$4 sm:$0xff]  }
   0x2   :  { %87 = vmatprep.subr.bf16.mxu0 %v770_v0  ;;  %v775_v4 = vld [vmem:[%s1049_s1 + $0x18] ss:$12 sps:$4 sm:$0xff]   ;;  %v25_v5 = vld [vmem:[%s1048_s0] sm:$0x1]  ;;  %v776_v6 = vld [vmem:[%s1049_s1 + $0x8] ss:$12 sps:$4 sm:$0xff]  }
   0x3   :  { %88 = vmatpush1.bf16.msra.mxu0 %v772_v1  ;;  %v777_v8 = vld [vmem:[%s1049_s1 + $0x20] ss:$12 sps:$4 sm:$0xff]   ;;  %v782_v13 = vld [vmem:[%s1050_s2 + $0x50] sm:$0xff]   ;;  %v784_v15 = vld [vmem:[%s1050_s2 + $0x58] sm:$0xff]  }
   0x4   :  { %89 = vmatprep.subr.bf16.mxu0 %v773_v3  ;;  %v778_v9 = vld [vmem:[%s1050_s2 + $0x40] sm:$0xff]   ;;  %v780_v11 = vld [vmem:[%s1050_s2 + $0x48] sm:$0xff]   ;;  %v783_v14 = vld [vmem:[%s1050_s2 + $0x10] sm:$0xff]  }
   0x5   :  { %v779_v10 = vld [vmem:[%s1050_s2] sm:$0xff]   ;;  %v781_v12 = vld [vmem:[%s1050_s2 + $0x8] sm:$0xff]   ;;  %v785_v16 = vld [vmem:[%s1050_s2 + $0x18] sm:$0xff]  }
   0x6   :  { %v786_v17 = vld [vmem:[%s1050_s2 + $0x60] sm:$0xff]  }
   0x7   :  { %90 = vmatpush1.bf16.msra.mxu0 %v775_v4  ;;  %v787_v18 = vld [vmem:[%s1050_s2 + $0x20] sm:$0xff]  }
   0x8   :  { %751 = vmatprep.subr.bf16.mxu0 %v840_v7 }
   0xa   :  { %661 = vmatmul.mubr.msk.bf16.vlgmr.msra.gmra.mrb[0].mxu0 %vm83_vm0, %v25_v5 }
   0xb   :  { %752 = vmatpush3.bf16.msra.mxu0 %v776_v6  ;;  %755 = vmatprep.mubr.msk.bf16.mxu0 %vm841_vm1, %v840_v7 }
   0xc   :  { %753 = vmatprep.subr.bf16.mxu0 %v840_v7 }
   0xf   :  { %754 = vmatpush3.bf16.msra.mxu0 %v777_v8 }
  0x10   :  { %705 = vmatprep.subr.bf16.mxu0 %v778_v9 }
  0x12   :  { %756 = vmatmul.mubr.msk.bf16.vlgmr.msra.gmra.mrb[4].mxu0 %vm83_vm0, %v25_v5 }
  0x13   :  { %706 = vmatpush3.bf16.msra.mxu0 %v779_v10 }
  0x14   :  { %707 = vmatprep.subr.bf16.mxu0 %v780_v11 }
  0x17   :  { %708 = vmatpush3.bf16.msra.mxu0 %v781_v12 }
  0x18   :  { %709 = vmatprep.subr.bf16.mxu0 %v782_v13 }
  0x1b   :  { %710 = vmatpush3.bf16.msra.mxu0 %v783_v14 }
  0x1c   :  { %711 = vmatprep.subr.bf16.mxu0 %v784_v15 }
  0x1f   :  { %712 = vmatpush3.bf16.msra.mxu0 %v785_v16 }
  0x20   :  { %11 = vsyncpa [#allocation3], 0  ;;  %713 = vmatprep.subr.bf16.mxu0 %v786_v17  ;;  %v788_v19 = vld [vmem:[%s1050_s2 + $0x68] sm:$0xff]   ;;  %v790_v21 = vld [vmem:[%s1050_s2 + $0x70] sm:$0xff]   ;;  %v36_v25 = vlaneseq  ;;  %vm376_vm2 = vcmask 1043456   ;;  %vm372_vm3 = vcmask 64512  }
  0x21   :  { %v789_v20 = vld [vmem:[%s1050_s2 + $0x28] sm:$0xff]   ;;  %v791_v22 = vld [vmem:[%s1050_s2 + $0x30] sm:$0xff]   ;;  %v792_v23 = vld [vmem:[%s1050_s2 + $0x78] sm:$0xff]   ;;  %vm639_vm4 = vcmask 254976  }
  0x22   :  { %v793_v24 = vld [vmem:[%s1050_s2 + $0x38] sm:$0xff]   ;;  %v953_v26 = vshrl.u32 %v36_v25, 7  ;;  %v34_v28 = vld [vmem:[%s1053_s5] ss:$2 sm:$0x7]  ;;  %v799_v3 = vld [vmem:[%s1052_s4 + $0x48] sm:$0xff]  }
  0x23   :  { %714 = vmatpush3.bf16.msra.mxu0 %v787_v18  ;;  %v344_v46 = vld [vmem:[%s1051_s3] sm:$0xff]  ;;  %v796_v61 = vld [vmem:[%s1051_s3 + $0x8] ss:$0 sps:$4 sm:$0xff]   ;;  %v801_v5 = vld [vmem:[%s1052_s4 + $0x50] sm:$0xff]  }
  0x24   :  { %715 = vmatprep.subr.bf16.mxu0 %v788_v19  ;;  %v38_v27 = vsub.s32 0, %v953_v26  ;;  %v42_v29 = vsub.s32 1, %v953_v26  ;;  %v681_v47 = vcombine.high %v344_v46, %v344_v46  ;;  %v680_v48 = vcombine.low %v344_v46, %v344_v46  ;;  %v797_v1 = vld [vmem:[%s1052_s4 + $0x40] sm:$0xff]   ;;  %v800_v4 = vld [vmem:[%s1052_s4 + $0x8] sm:$0xff]   ;;  %v802_v6 = vld [vmem:[%s1052_s4 + $0x10] sm:$0xff]  }
  0x25   :  { %v46_v50 = vsub.s32 2, %v953_v26  ;;  %v384_v0 = vsel %vm376_vm2, %v796_v61, 0  ;;  %v798_v2 = vld [vmem:[%s1052_s4] sm:$0xff]   ;;  %v804_v8 = vld [vmem:[%s1052_s4 + $0x18] sm:$0xff]   ;;  %v807_v11 = vld [vmem:[%s1052_s4 + $0x68] sm:$0xff]  }
  0x26   :  { %v39_v30 = vrot.slane %v34_v28, %v38_v27  ;;  %v43_v31 = vrot.slane %v34_v28, %v42_v29  ;;  %683 = vmatprep.subr.msk.bf16.mxu1 %vm376_vm2, %v681_v47  ;;  %v378_v49 = vsel %vm376_vm2, %v680_v48, 0  ;;  %v805_v9 = vld [vmem:[%s1052_s4 + $0x60] sm:$0xff]   ;;  %v808_v12 = vld [vmem:[%s1052_s4 + $0x28] sm:$0xff]   ;;  %v809_v13 = vld [vmem:[%s1052_s4 + $0x70] sm:$0xff]  }
  0x27   :  { %716 = vmatpush3.bf16.msra.mxu0 %v789_v20  ;;  %387 = vmatpush1.bf16.msra.mxu1 %v378_v49  ;;  %v47_v51 = vrot.slane %v34_v28, %v46_v50  ;;  %v806_v10 = vld [vmem:[%s1052_s4 + $0x20] sm:$0xff]   ;;  %v810_v14 = vld [vmem:[%s1052_s4 + $0x30] sm:$0xff]   ;;  %v811_v15 = vld [vmem:[%s1052_s4 + $0x78] sm:$0xff]  }
  0x28   :  { %717 = vmatprep.subr.bf16.mxu0 %v790_v21  ;;  %759 = vmatprep.subr.bf16.mxu1 %v840_v7  ;;  %v812_v16 = vld [vmem:[%s1052_s4 + $0x38] sm:$0xff]   ;;  %v679_v17 = vld [vmem:[%s1053_s5 + $0x1] ss:$2 sm:$0x7] }
  0x29   :  { %v352_v18 = vrot.slane %v679_v17, %v38_v27  ;;  %v356_v19 = vrot.slane %v679_v17, %v42_v29  ;;  %v360_v27 = vrot.slane %v679_v17, %v46_v50 }
  0x2b   :  { %718 = vmatpush3.bf16.msra.mxu0 %v791_v22 }
  0x2c   :  { %719 = vmatprep.subr.bf16.mxu0 %v792_v23 }
  0x2f   :  { %720 = vmatpush3.bf16.msra.mxu0 %v793_v24 }
  0xdd   :  { %v121_v32 = vpop.f32.mrb[0].mxu0 }
  0xde   :  { %v122_v33 = vadd.f32 %v121_v32, %v39_v30  ;;  %v123_v34 = vpop.f32.mrb[1].mxu0 }
  0xdf   :  { %v124_v35 = vadd.f32 %v123_v34, %v43_v31  ;;  %v125_v36 = vpop.f32.mrb[2].mxu0 }
  0xe0   :  { %v168_v37 = vmax.f32 %v122_v33, 0.0  ;;  %v126_v38 = vpop.f32.mrb[3].mxu0 }
  0xe1   :  { %v169_v39 = vmax.f32 %v124_v35, 0.0 }
  0xe2   :  { %v170_v41 = vpack.c.bf16 %v168_v37, %v168_v37 }
  0xe3   :  { %v171_v40 = vpack.c.bf16 %v169_v39, %v169_v39 }
  0xe5   :  { %332 = vmatprep.mubr.bf16.mxu0 %v171_v40  ;;  %v162_v42 = vpop.f32.mrb[4].mxu0 }
  0xe6   :  { %333 = vmatmul.mubr.bf16.vlgmr.msra.gmra.mrb[8].mxu0 %v170_v41  ;;  %v757_v43 = vpop.f32.mrb[5].mxu0  ;;  %v163_v54 = vadd.f32 %v162_v42, %v47_v51 }
  0xe7   :  { %v165_v44 = vpop.f32.mrb[6].mxu0 }
  0xe8   :  { %v758_v45 = vpop.f32.mrb[7].mxu0 }
 0x1b9   :  { %v721_v52 = vpop.f32.mrb[8].mxu0 }
 0x1ba   :  { %v722_v53 = vpop.f32.mrb[9].mxu0 }
 0x1bb   :  { %v723_v55 = vadd.f32 %v722_v53, %v721_v52  ;;  %v724_v56 = vpop.f32.mrb[10].mxu0 }
 0x1bc   :  { %v725_v57 = vpop.f32.mrb[11].mxu0 }
 0x1bd   :  { %v335_v58 = vadd.f32 %v723_v55, %v163_v54 }
 0x1bf   :  { %813 = vtanh.f32 %v335_v58 }
 0x1c9   :  { %v814_v59 = vpop.eup %813 }
 0x1ca   :  { %v341_v60 = vmul.f32 15.0, %v814_v59 }
 0x1cc   :  { %v765_v62 = vround.rtne.f32 %v341_v60 }
 0x1ce   :  { %v343_v63 = vpack.c.bf16 %v765_v62, %v765_v62 }
 0x1d0   :  { %684 = vmatmul.mubr.msk.bf16.vlgmr.msra.gmra.mrb[0].mxu1 %vm372_vm3, %v343_v63 }
 0x1d1   :  { %760 = vmatpush3.bf16.msra.mxu1 %v384_v0  ;;  %761 = vmatprep.mubr.msk.bf16.mxu1 %vm841_vm1, %v840_v7  ;;  %v803_v7 = vld [vmem:[%s1052_s4 + $0x58] sm:$0xff]   ;;  %s842_s4 = smov [#allocation2]  }
 0x1d2   :  { %729 = vmatprep.subr.bf16.mxu1 %v797_v1  ;;  %s647_s5 = sshll.u32 %s842_s4, 4  ;;  %s648_s5 = int_to_ptr.vmem [resolvable:$true] %s647_s5 }
 0x1d3   :  { %s815_s25 = scalar_lea.vmem %s648_s5, 32  ;;  %p820_p1 = scmp.lt.s32.totalorder %s648_s5, %s648_s5 }
 0x1d4   :  { %p816_p0 = scmp.ne.s32.totalorder %s648_s5, %s815_s25  ;;  %p821_p2 = scmp.lt.s32.totalorder %s815_s25, %s815_s25 }
 0x1d6   :  { %p822_p3 = por %p821_p2, %p820_p1 }
 0x1d8   :  { %762 = vmatmul.mubr.msk.bf16.vlgmr.msra.gmra.mrb[4].mxu1 %vm372_vm3, %v343_v63  ;;  %p823_p4 = pnand %p822_p3, %p816_p0 }
 0x1d9   :  { %730 = vmatpush3.bf16.msra.mxu1 %v798_v2 }
 0x1da   :  { %731 = vmatprep.subr.bf16.mxu1 %v799_v3 }
 0x1dd   :  { %732 = vmatpush3.bf16.msra.mxu1 %v800_v4 }
 0x1de   :  { %733 = vmatprep.subr.bf16.mxu1 %v801_v5 }
 0x1e1   :  { %734 = vmatpush3.bf16.msra.mxu1 %v802_v6 }
 0x1e2   :  { %735 = vmatprep.subr.bf16.mxu1 %v803_v7 }
 0x1e5   :  { %736 = vmatpush3.bf16.msra.mxu1 %v804_v8 }
 0x1e6   :  { %737 = vmatprep.subr.bf16.mxu1 %v805_v9 }
 0x1e9   :  { %738 = vmatpush3.bf16.msra.mxu1 %v806_v10 }
 0x1ea   :  { %739 = vmatprep.subr.bf16.mxu1 %v807_v11 }
 0x1ed   :  { %740 = vmatpush3.bf16.msra.mxu1 %v808_v12 }
 0x1ee   :  { %741 = vmatprep.subr.bf16.mxu1 %v809_v13 }
 0x1f1   :  { %742 = vmatpush3.bf16.msra.mxu1 %v810_v14 }
 0x1f2   :  { %743 = vmatprep.subr.bf16.mxu1 %v811_v15 }
 0x1f5   :  { %744 = vmatpush3.bf16.msra.mxu1 %v812_v16 }
 0x2a3   :  { %v420_v20 = vpop.f32.mrb[0].mxu1 }
 0x2a4   :  { %v421_v21 = vadd.f32 %v420_v20, %v352_v18  ;;  %v422_v22 = vpop.f32.mrb[1].mxu1 }
 0x2a5   :  { %v423_v23 = vadd.f32 %v422_v22, %v356_v19  ;;  %v424_v24 = vpop.f32.mrb[2].mxu1 }
 0x2a6   :  { %v467_v25 = vmax.f32 %v421_v21, 0.0  ;;  %v425_v28 = vpop.f32.mrb[3].mxu1 }
 0x2a7   :  { %v468_v30 = vmax.f32 %v423_v23, 0.0 }
 0x2a8   :  { %v469_v32 = vpack.c.bf16 %v467_v25, %v467_v25 }
 0x2a9   :  { %v470_v31 = vpack.c.bf16 %v468_v30, %v468_v30 }
 0x2ab   :  { %v461_v33 = vpop.f32.mrb[4].mxu1  ;;  %631 = vmatprep.mubr.bf16.mxu1 %v470_v31 }
 0x2ac   :  { %v763_v34 = vpop.f32.mrb[5].mxu1  ;;  %632 = vmatmul.mubr.bf16.vlgmr.msra.gmra.mrb[8].mxu1 %v469_v32  ;;  %v462_v38 = vadd.f32 %v461_v33, %v360_v27 }
 0x2ad   :  { %v464_v35 = vpop.f32.mrb[6].mxu1 }
 0x2ae   :  { %v764_v36 = vpop.f32.mrb[7].mxu1 }
 0x37f   :  { %v745_v29 = vpop.f32.mrb[8].mxu1 }
 0x380   :  { %v746_v37 = vpop.f32.mrb[9].mxu1 }
 0x381   :  { %v747_v39 = vadd.f32 %v746_v37, %v745_v29  ;;  %v748_v40 = vpop.f32.mrb[10].mxu1 }
 0x382   :  { %v749_v41 = vpop.f32.mrb[11].mxu1 }
 0x383   :  { %v634_v42 = vadd.f32 %v747_v39, %v462_v38 }
 0x385   :  { %640 = vst.msk [vmem:[#allocation2] sm:$0x3] %vm639_vm4, %v634_v42 }
 0x386   :  { %826 = shalt.err (!%p823_p4)
}
 0x387   :  { %s827_s28 = scalar_lea.hbm %s1054_s6, 32 }
 0x388   :  { %p828_p5 = scmp.ne.s32.totalorder %s1054_s6, %s827_s28  ;;  %p831_p6 = scmp.lt.u32.totalorder %s827_s28, %s1054_s6 }
 0x38a   :  { %p833_p7 = pnand %p831_p6, %p828_p5 }
 0x38c   :  { %836 = shalt.err (!%p833_p7)
}
 0x38d   :  { %650 = dma.vmem_to_hbm [thread:$0]  %s648_s5, 32, %s1054_s6, [#allocation3]  }
 0x38e   :  { %837 = dma.done.wait [#allocation3], 32  }
 0x38f   :  { %838 = vsyncadd [#allocation3], 4294967264 }
 0x390   :  { %654 = vsyncpa [#allocation3], 1 }

</bundles_post_ra>
